<compile_context>
chip_gen: v6e
topology: v6e:2x2x1
jax: 0.10.0
libtpu: 0.0.40
codegen_flags: <defaults>
</compile_context>

<pallas_src>
import functools

import jax
import jax.numpy as jnp
import numpy as np
from jax import lax
from jax.experimental import pallas as pl
from jax.experimental.pallas import tpu as pltpu


# ------------------------------ Pallas kernel --------------------------------

def _ds_kernel(ph_ref, w_ref, pp_ref, out_ref, rhs_ref, *,
               n_conv, c_in, tap_plan, pool_plan, t_len, r_t, ld, wo):
    """One (batch, row-tile) block.

    ph_ref : [1, 1, 4*Cin, Lin]     flattened phase block (row halo folded in)
    w_ref  : [nConv, 9*Cin]         conv taps (tap-major K), BN scale folded in
    pp_ref : [nOut, 3]              per-channel (scale, shift, prelu_alpha), f32
    out_ref: [1, nOut, 1, r_t, Wo]  NCHW output rows of this tile
    rhs_ref: [9*Cin, T]             VMEM scratch, stacked conv RHS, T = r_t*(Wo+1)
    """

    def phase_slice(p, off):
        # Contiguous 2-D slice [Cin, T] of phase p at a constant flat offset.
        return ph_ref[0, 0, p * c_in:(p + 1) * c_in, off:off + t_len]

    # Stack the 9 tap slices along K, then ONE K=9*Cin MXU matmul
    # (vs. 9 accumulated K=Cin matmuls: far better MXU-depth utilization,
    #  one result pop, no 8 extra [nConv, T] VPU adds).
    for t, (p, off) in enumerate(tap_plan):
        rhs_ref[t * c_in:(t + 1) * c_in, :] = phase_slice(p, off)
    acc = jnp.dot(w_ref[...], rhs_ref[...], preferred_element_type=jnp.float32)

    # BN scale is folded into the weights: conv epilogue is add + PReLU (f32).
    zc = acc + pp_ref[:n_conv, 1:2]
    yc = jnp.where(zc > 0, zc, zc * pp_ref[:n_conv, 2:3])

    if pool_plan is not None:
        # MaxPool2d(2, 2): elementwise max over the 4 window phases.
        # Epilogue kept in f32 (v5e has no bf16 VPU path; max is monotone so
        # the cast placement does not change the result).
        mx = phase_slice(*pool_plan[0]).astype(jnp.float32)
        for p, off in pool_plan[1:]:
            mx = jnp.maximum(mx, phase_slice(p, off).astype(jnp.float32))
        zp = mx * pp_ref[n_conv:, 0:1] + pp_ref[n_conv:, 1:2]
        yp = jnp.where(zp > 0, zp, zp * pp_ref[n_conv:, 2:3])
        y = jnp.concatenate([yc, yp], axis=0)        # single [nOut, T] result
    else:
        y = yc
    y = y.astype(out_ref.dtype)

    # Store straight into the NCHW output block, dropping the junk column
    # (row pitch inside the flattened tile is Wo+1).  This removes the
    # post-kernel swapaxes + slice HBM pass of the previous version.
    for j in range(r_t):
        out_ref[0, :, 0, j, :] = y[:, j * ld:j * ld + wo]


# ------------------------------ JAX-side glue ---------------------------------

def _vmem_plan():
    """(capacity, tile budget, vmem_limit_bytes) — generation aware."""
    try:
        cap = int(pltpu.get_tpu_info().vmem_capacity_bytes)
    except Exception:                      # pragma: no cover - conservative fallback
        cap = 64 << 20                     # v7x per-core capacity (smallest)
    tile_budget = min(cap // 3, 40 << 20)  # v7x ~21 MiB, v5e/v6e 40 MiB
    vmem_limit = min((cap * 3) // 4, 96 << 20)
    return cap, tile_budget, vmem_limit


def _pick_row_tile(ho, n_batch, c_in, n_out, ld, wo, in_item, budget_bytes,
                   max_unroll=64):
    """Row tile: fits the budget, lane-dense, >= 2 grid steps for batch==1."""

    def step_bytes(rt):
        blk_in = 4 * c_in * (rt + 2) * ld * in_item        # phase block
        blk_out = n_out * rt * wo * 4                      # f32 output block
        rhs = 9 * c_in * rt * ld * in_item                 # stacked-RHS scratch
        return 2 * (blk_in + blk_out) + rhs

    cands = [r for r in range(1, min(ho, max_unroll) + 1) if ho % r == 0]
    fitting = [r for r in cands if step_bytes(r) <= budget_bytes] or [cands[0]]
    if n_batch == 1:
        # v7x has 2 TensorCores per chip: keep >= 2 grid steps when possible.
        halved = [r for r in fitting if ho // r >= 2]
        if halved:
            fitting = halved

    def score(rt):
        t = rt * ld
        return (t % 128 == 0, t >= 512, t)

    return max(fitting, key=score)


def downsampling_block(x, params, *, compute_dtype=jnp.bfloat16):
    """Pallas implementation of DownSamplingBlock.forward.  x: [N, nIn, H, W]."""
    n, n_in, h, w = x.shape
    assert n_in == params["nIn"]
    n_out = params["nOut"]
    n_conv = n_out - n_in if n_in < n_out else n_out
    eps = 1e-3

    ho = (h - 1) // 2 + 1
    wo = (w - 1) // 2 + 1
    if n_in < n_out:
        assert h % 2 == 0 and w % 2 == 0, "max-pool branch needs even H, W"
    ld = wo + 1                              # padded row pitch inside the kernel

    # Fused inference-BN affine + PReLU params, one small (nOut, 3) f32 block.
    scale = params["bn_gamma"] / jnp.sqrt(params["bn_var"] + eps)
    shift = params["bn_beta"] - params["bn_mean"] * scale
    alpha = params["prelu_alpha"]
    pp = jnp.stack([scale, shift, alpha], axis=1).astype(jnp.float32)   # [nOut, 3]

    # PyTorch conv weight [nConv, Cin, 3, 3] -> [nConv, 9*Cin] (tap-major K).
    # BN scale folded in f32 *before* the bf16 cast (avoids amplified rounding).
    w9 = jnp.transpose(params["conv_w"].astype(jnp.float32),
                       (2, 3, 0, 1)).reshape(9, n_conv, n_in)
    w9 = w9 * scale[:n_conv][None, :, None]
    w_fused = jnp.transpose(w9, (1, 0, 2)).reshape(n_conv, 9 * n_in)
    w_fused = w_fused.astype(compute_dtype)

    # 2x2 phase decomposition of the zero-padded input (in compute_dtype, so the
    # host-side preprocessing pass already moves half the bytes when bf16):
    #   phases[n, 2*pr+pc, c, y, x] = xpad[n, c, 2*y + pr, 2*x + pc]
    xc = x.astype(compute_dtype)
    hp, wp = 2 * ho + 2, 2 * wo + 2
    xp = jnp.pad(xc, ((0, 0), (0, 0), (1, hp - h - 1), (1, wp - w - 1)))
    phases = jnp.stack([xp[:, :, pr::2, pc::2] for pr in (0, 1) for pc in (0, 1)],
                       axis=1)                              # [N, 4, Cin, Ho+1, Wo+1]
    phases = jnp.pad(phases, ((0, 0), (0, 0), (0, 0), (0, 1), (0, 0)))  # rows -> Ho+2

    # Row tiling (generation-aware VMEM budget) with a 2-row halo folded in.
    cap, tile_budget, vmem_limit = _vmem_plan()
    in_item = jnp.dtype(compute_dtype).itemsize
    r_t = _pick_row_tile(ho, n, n_in, n_out, ld, wo, in_item, tile_budget)
    n_rt = ho // r_t
    rows = np.arange(n_rt)[:, None] * r_t + np.arange(r_t + 2)[None, :]
    pht = phases[:, :, :, rows, :]                          # [N, 4, Cin, n_rt, R+2, Ld]
    pht = jnp.moveaxis(pht, 3, 1)                           # [N, n_rt, 4, Cin, R+2, Ld]
    l_in = (r_t + 2) * ld
    pht = pht.reshape(n, n_rt, 4 * n_in, l_in)

    t_len = r_t * ld                                        # flattened output tile
    # Tap t = kh*3+kw reads phase (kh%2, kw%2) at a constant flat offset.
    tap_plan = tuple(((kh % 2) * 2 + (kw % 2), (kh // 2) * ld + (kw // 2))
                     for kh in range(3) for kw in range(3))
    pool_plan = ((3, 0), (2, 1), (1, ld), (0, ld + 1)) if n_in < n_out else None

    # Per-step VMEM footprint check (double-buffered in/out + scratch + params).
    step_bytes = (2 * (4 * n_in * l_in * in_item + n_out * r_t * wo * 4
                       + n_conv * 9 * n_in * in_item + n_out * 3 * 4)
                  + 9 * n_in * t_len * in_item)
    if step_bytes > int(0.9 * cap):
        raise ValueError(
            f"DownSamplingBlock tile ({step_bytes / 2**20:.1f} MiB/step) exceeds "
            f"VMEM capacity ({cap / 2**20:.0f} MiB); image too wide for this kernel.")
    vmem_limit = max(vmem_limit, min(int(1.25 * step_bytes), int(0.9 * cap)))

    kernel = functools.partial(_ds_kernel, n_conv=n_conv, c_in=n_in,
                               tap_plan=tap_plan, pool_plan=pool_plan,
                               t_len=t_len, r_t=r_t, ld=ld, wo=wo)

    out = pl.pallas_call(
        kernel,
        out_shape=jax.ShapeDtypeStruct((n, n_out, n_rt, r_t, wo), x.dtype),
        grid_spec=pltpu.PrefetchScalarGridSpec(
            num_scalar_prefetch=0,
            grid=(n, n_rt),
            in_specs=[
                pl.BlockSpec((1, 1, 4 * n_in, l_in), lambda i, r: (i, r, 0, 0)),
                pl.BlockSpec((n_conv, 9 * n_in), lambda i, r: (0, 0)),
                pl.BlockSpec((n_out, 3), lambda i, r: (0, 0)),
            ],
            out_specs=pl.BlockSpec((1, n_out, 1, r_t, wo),
                                   lambda i, r: (i, 0, r, 0, 0)),
            scratch_shapes=[pltpu.VMEM((9 * n_in, t_len), compute_dtype)],
        ),
        compiler_params=pltpu.CompilerParams(
            dimension_semantics=("parallel", "parallel"),
            vmem_limit_bytes=int(vmem_limit)),
    )(pht, w_fused, pp)

    # (N, nOut, n_rt, r_t, Wo) -> (N, nOut, Ho, Wo): contiguous-dim merge (free).
    return out.reshape(n, n_out, ho, wo)


# ------------------------------ reference (plain JAX) -------------------------

def reference(x, params):
    n_in, n_out = params["nIn"], params["nOut"]
    conv = lax.conv_general_dilated(
        x, params["conv_w"], window_strides=(2, 2), padding=((1, 1), (1, 1)),
        dimension_numbers=("NCHW", "OIHW", "NCHW"))
    if n_in < n_out:
        pool = lax.reduce_window(x, -jnp.inf, lax.max,
                                 (1, 1, 2, 2), (1, 1, 2, 2), "VALID")
        y = jnp.concatenate([conv, pool], axis=1)
    else:
        y = conv
    eps = 1e-3
    scale = params["bn_gamma"] / jnp.sqrt(params["bn_var"] + eps)
    shift = params["bn_beta"] - params["bn_mean"] * scale
    y = y * scale[None, :, None, None] + shift[None, :, None, None]
    a = params["prelu_alpha"][None, :, None, None]
    return jnp.where(y > 0, y, a * y)


# ------------------------------ main ------------------------------------------

if __name__ == "__main__":
    key = jax.random.PRNGKey(0)
    kx, kw_, kg, kb, km, kv, ka = jax.random.split(key, 7)

    # Branch 1: nIn < nOut  (conv3x3/s2 || maxpool2x2 -> concat -> BN -> PReLU).
    n, n_in, n_out, h, w = 2, 4, 8, 16, 16
    n_conv = n_out - n_in
    x = jax.random.normal(kx, (n, n_in, h, w), dtype=jnp.float32)
    params = {
        "nIn": n_in, "nOut": n_out,
        "conv_w": 0.1 * jax.random.normal(kw_, (n_conv, n_in, 3, 3), dtype=jnp.float32),
        "bn_gamma": 0.5 + jax.random.uniform(kg, (n_out,), dtype=jnp.float32),
        "bn_beta": 0.1 * jax.random.normal(kb, (n_out,), dtype=jnp.float32),
        "bn_mean": 0.1 * jax.random.normal(km, (n_out,), dtype=jnp.float32),
        "bn_var": 0.5 + jax.random.uniform(kv, (n_out,), dtype=jnp.float32),
        "prelu_alpha": 0.25 + 0.1 * jax.random.uniform(ka, (n_out,), dtype=jnp.float32),
    }
    ref = jax.block_until_ready(reference(x, params))

    # f32 compute path: tight tolerance.
    out = jax.block_until_ready(
        downsampling_block(x, params, compute_dtype=jnp.float32))
    assert out.shape == (n, n_out, h // 2, w // 2), out.shape
    np.testing.assert_allclose(np.asarray(out), np.asarray(ref), rtol=1e-4, atol=1e-4)

    # bf16 storage / MXU path (default, the HBM-traffic-halving configuration).
    out_bf = jax.block_until_ready(downsampling_block(x, params))
    np.testing.assert_allclose(np.asarray(out_bf), np.asarray(ref),
                               rtol=3e-2, atol=3e-2)

    # Branch 2: nIn >= nOut  (conv3x3/s2 -> BN -> PReLU), as used by downsample_2.
    n_in2, n_out2 = 8, 4
    x2 = jax.random.normal(kx, (n, n_in2, h, w), dtype=jnp.float32)
    params2 = {
        "nIn": n_in2, "nOut": n_out2,
        "conv_w": 0.1 * jax.random.normal(kw_, (n_out2, n_in2, 3, 3), dtype=jnp.float32),
        "bn_gamma": params["bn_gamma"][:n_out2],
        "bn_beta": params["bn_beta"][:n_out2],
        "bn_mean": params["bn_mean"][:n_out2],
        "bn_var": params["bn_var"][:n_out2],
        "prelu_alpha": params["prelu_alpha"][:n_out2],
    }
    ref2 = jax.block_until_ready(reference(x2, params2))
    out2 = jax.block_until_ready(
        downsampling_block(x2, params2, compute_dtype=jnp.float32))
    assert out2.shape == (n, n_out2, h // 2, w // 2), out2.shape
    np.testing.assert_allclose(np.asarray(out2), np.asarray(ref2),
                               rtol=1e-4, atol=1e-4)

    print("KERNEL_OK")
</pallas_src>

<mosaic_0001>
module attributes {stable_mosaic.version = 11 : i64} {
  func.func @_ds_kernel(%arg0: i32, %arg1: i32, %arg2: memref<1x1x16x90xf32, #tpu.memory_space<vmem>>, %arg3: memref<4x36xf32, #tpu.memory_space<vmem>>, %arg4: memref<8x3xf32, #tpu.memory_space<vmem>>, %arg5: memref<1x8x1x8x8xf32, #tpu.memory_space<vmem>>, %arg6: memref<36x72xf32, #tpu.memory_space<vmem>>) attributes {dimension_semantics = [#tpu.dimension_semantics<parallel>, #tpu.dimension_semantics<parallel>], iteration_bounds = array<i64: 2, 1>, scalar_prefetch = 0 : i64, scratch_operands = 1 : i64, tpu.core_type = #tpu.core_type<tc>, window_params = [{transform_indices = @transform_0, window_bounds = array<i64: 1, 1, 16, 90>}, {pipeline_mode = #tpu.pipeline_mode<synchronous>, transform_indices = @transform_1, window_bounds = array<i64: 4, 36>}, {pipeline_mode = #tpu.pipeline_mode<synchronous>, transform_indices = @transform_2, window_bounds = array<i64: 8, 3>}, {transform_indices = @transform_3, window_bounds = array<i64: 1, 8, 1, 8, 8>}]} {
    %c0 = arith.constant 0 : index
    %c0_0 = arith.constant 0 : index
    %c0_1 = arith.constant 0 : index
    %c0_2 = arith.constant 0 : index
    %0 = vector.load %arg2[%c0, %c0_0, %c0_1, %c0_2] : memref<1x1x16x90xf32, #tpu.memory_space<vmem>>, vector<1x1x4x72xf32>
    %1 = vector.shape_cast %0 : vector<1x1x4x72xf32> to vector<4x72xf32>
    %c0_3 = arith.constant 0 : index
    %c0_4 = arith.constant 0 : index
    %2 = vector.load %arg6[%c0_3, %c0_4] : memref<36x72xf32, #tpu.memory_space<vmem>>, vector<4x72xf32>
    tpu.vector_store %arg6[%c0_3, %c0_4], %1 {strides = array<i32>} : memref<36x72xf32, #tpu.memory_space<vmem>>, vector<4x72xf32>,
    %c0_5 = arith.constant 0 : index
    %c0_6 = arith.constant 0 : index
    %c4 = arith.constant 4 : index
    %c0_7 = arith.constant 0 : index
    %3 = vector.load %arg2[%c0_5, %c0_6, %c4, %c0_7] : memref<1x1x16x90xf32, #tpu.memory_space<vmem>>, vector<1x1x4x72xf32>
    %4 = vector.shape_cast %3 : vector<1x1x4x72xf32> to vector<4x72xf32>
    %c4_8 = arith.constant 4 : index
    %c0_9 = arith.constant 0 : index
    %5 = vector.load %arg6[%c4_8, %c0_9] : memref<36x72xf32, #tpu.memory_space<vmem>>, vector<4x72xf32>
    tpu.vector_store %arg6[%c4_8, %c0_9], %4 {strides = array<i32>} : memref<36x72xf32, #tpu.memory_space<vmem>>, vector<4x72xf32>,
    %c0_10 = arith.constant 0 : index
    %c0_11 = arith.constant 0 : index
    %c0_12 = arith.constant 0 : index
    %c1 = arith.constant 1 : index
    %6 = vector.load %arg2[%c0_10, %c0_11, %c0_12, %c1] : memref<1x1x16x90xf32, #tpu.memory_space<vmem>>, vector<1x1x4x72xf32>
    %7 = vector.shape_cast %6 : vector<1x1x4x72xf32> to vector<4x72xf32>
    %c8 = arith.constant 8 : index
    %c0_13 = arith.constant 0 : index
    %8 = vector.load %arg6[%c8, %c0_13] : memref<36x72xf32, #tpu.memory_space<vmem>>, vector<4x72xf32>
    tpu.vector_store %arg6[%c8, %c0_13], %7 {strides = array<i32>} : memref<36x72xf32, #tpu.memory_space<vmem>>, vector<4x72xf32>,
    %c0_14 = arith.constant 0 : index
    %c0_15 = arith.constant 0 : index
    %c8_16 = arith.constant 8 : index
    %c0_17 = arith.constant 0 : index
    %9 = vector.load %arg2[%c0_14, %c0_15, %c8_16, %c0_17] : memref<1x1x16x90xf32, #tpu.memory_space<vmem>>, vector<1x1x4x72xf32>
    %10 = vector.shape_cast %9 : vector<1x1x4x72xf32> to vector<4x72xf32>
    %c12 = arith.constant 12 : index
    %c0_18 = arith.constant 0 : index
    %11 = vector.load %arg6[%c12, %c0_18] : memref<36x72xf32, #tpu.memory_space<vmem>>, vector<4x72xf32>
    tpu.vector_store %arg6[%c12, %c0_18], %10 {strides = array<i32>} : memref<36x72xf32, #tpu.memory_space<vmem>>, vector<4x72xf32>,
    %c0_19 = arith.constant 0 : index
    %c0_20 = arith.constant 0 : index
    %c12_21 = arith.constant 12 : index
    %c0_22 = arith.constant 0 : index
    %12 = vector.load %arg2[%c0_19, %c0_20, %c12_21, %c0_22] : memref<1x1x16x90xf32, #tpu.memory_space<vmem>>, vector<1x1x4x72xf32>
    %13 = vector.shape_cast %12 : vector<1x1x4x72xf32> to vector<4x72xf32>
    %c16 = arith.constant 16 : index
    %c0_23 = arith.constant 0 : index
    %14 = vector.load %arg6[%c16, %c0_23] : memref<36x72xf32, #tpu.memory_space<vmem>>, vector<4x72xf32>
    tpu.vector_store %arg6[%c16, %c0_23], %13 {strides = array<i32>} : memref<36x72xf32, #tpu.memory_space<vmem>>, vector<4x72xf32>,
    %c0_24 = arith.constant 0 : index
    %c0_25 = arith.constant 0 : index
    %c8_26 = arith.constant 8 : index
    %c1_27 = arith.constant 1 : index
    %15 = vector.load %arg2[%c0_24, %c0_25, %c8_26, %c1_27] : memref<1x1x16x90xf32, #tpu.memory_space<vmem>>, vector<1x1x4x72xf32>
    %16 = vector.shape_cast %15 : vector<1x1x4x72xf32> to vector<4x72xf32>
    %c20 = arith.constant 20 : index
    %c0_28 = arith.constant 0 : index
    %17 = vector.load %arg6[%c20, %c0_28] : memref<36x72xf32, #tpu.memory_space<vmem>>, vector<4x72xf32>
    tpu.vector_store %arg6[%c20, %c0_28], %16 {strides = array<i32>} : memref<36x72xf32, #tpu.memory_space<vmem>>, vector<4x72xf32>,
    %c0_29 = arith.constant 0 : index
    %c0_30 = arith.constant 0 : index
    %c0_31 = arith.constant 0 : index
    %c9 = arith.constant 9 : index
    %18 = vector.load %arg2[%c0_29, %c0_30, %c0_31, %c9] : memref<1x1x16x90xf32, #tpu.memory_space<vmem>>, vector<1x1x4x72xf32>
    %19 = vector.shape_cast %18 : vector<1x1x4x72xf32> to vector<4x72xf32>
    %c24 = arith.constant 24 : index
    %c0_32 = arith.constant 0 : index
    %20 = vector.load %arg6[%c24, %c0_32] : memref<36x72xf32, #tpu.memory_space<vmem>>, vector<4x72xf32>
    tpu.vector_store %arg6[%c24, %c0_32], %19 {strides = array<i32>} : memref<36x72xf32, #tpu.memory_space<vmem>>, vector<4x72xf32>,
    %c0_33 = arith.constant 0 : index
    %c0_34 = arith.constant 0 : index
    %c4_35 = arith.constant 4 : index
    %c9_36 = arith.constant 9 : index
    %21 = vector.load %arg2[%c0_33, %c0_34, %c4_35, %c9_36] : memref<1x1x16x90xf32, #tpu.memory_space<vmem>>, vector<1x1x4x72xf32>
    %22 = vector.shape_cast %21 : vector<1x1x4x72xf32> to vector<4x72xf32>
    %c28 = arith.constant 28 : index
    %c0_37 = arith.constant 0 : index
    %23 = vector.load %arg6[%c28, %c0_37] : memref<36x72xf32, #tpu.memory_space<vmem>>, vector<4x72xf32>
    tpu.vector_store %arg6[%c28, %c0_37], %22 {strides = array<i32>} : memref<36x72xf32, #tpu.memory_space<vmem>>, vector<4x72xf32>,
    %c0_38 = arith.constant 0 : index
    %c0_39 = arith.constant 0 : index
    %c0_40 = arith.constant 0 : index
    %c10 = arith.constant 10 : index
    %24 = vector.load %arg2[%c0_38, %c0_39, %c0_40, %c10] : memref<1x1x16x90xf32, #tpu.memory_space<vmem>>, vector<1x1x4x72xf32>
    %25 = vector.shape_cast %24 : vector<1x1x4x72xf32> to vector<4x72xf32>
    %c32 = arith.constant 32 : index
    %c0_41 = arith.constant 0 : index
    %26 = vector.load %arg6[%c32, %c0_41] : memref<36x72xf32, #tpu.memory_space<vmem>>, vector<4x72xf32>
    tpu.vector_store %arg6[%c32, %c0_41], %25 {strides = array<i32>} : memref<36x72xf32, #tpu.memory_space<vmem>>, vector<4x72xf32>,
    %c0_42 = arith.constant 0 : index
    %c0_43 = arith.constant 0 : index
    %27 = vector.load %arg3[%c0_42, %c0_43] : memref<4x36xf32, #tpu.memory_space<vmem>>, vector<4x36xf32>
    %c0_44 = arith.constant 0 : index
    %c0_45 = arith.constant 0 : index
    %28 = vector.load %arg6[%c0_44, %c0_45] : memref<36x72xf32, #tpu.memory_space<vmem>>, vector<36x72xf32>
    %cst = arith.constant dense<0.000000e+00> : vector<4x72xf32>
    %29 = tpu.matmul %27, %28, %cst {dimension_numbers = #tpu.dot_dimension_numbers<[1], [0], [0], [1], [0, 0, 1, 1], [], []>} : vector<4x36xf32>, vector<36x72xf32>, vector<4x72xf32> -> vector<4x72xf32>
    %c0_46 = arith.constant 0 : index
    %c1_47 = arith.constant 1 : index
    %30 = vector.load %arg4[%c0_46, %c1_47] : memref<8x3xf32, #tpu.memory_space<vmem>>, vector<4x1xf32>
    %31 = vector.broadcast %30 : vector<4x1xf32> to vector<4x72xf32>
    %32 = arith.addf %29, %31 : vector<4x72xf32>
    %cst_48 = arith.constant 0.000000e+00 : f32
    %33 = vector.broadcast %cst_48 : f32 to vector<4x72xf32>
    %34 = arith.cmpf ogt, %32, %33 : vector<4x72xf32>
    %c0_49 = arith.constant 0 : index
    %c2 = arith.constant 2 : index
    %35 = vector.load %arg4[%c0_49, %c2] : memref<8x3xf32, #tpu.memory_space<vmem>>, vector<4x1xf32>
    %36 = vector.broadcast %35 : vector<4x1xf32> to vector<4x72xf32>
    %37 = arith.mulf %32, %36 : vector<4x72xf32>
    %38 = arith.select %34, %32, %37 : vector<4x72xi1>, vector<4x72xf32>
    %c0_50 = arith.constant 0 : index
    %c0_51 = arith.constant 0 : index
    %c12_52 = arith.constant 12 : index
    %c0_53 = arith.constant 0 : index
    %39 = vector.load %arg2[%c0_50, %c0_51, %c12_52, %c0_53] : memref<1x1x16x90xf32, #tpu.memory_space<vmem>>, vector<1x1x4x72xf32>
    %40 = vector.shape_cast %39 : vector<1x1x4x72xf32> to vector<4x72xf32>
    %c0_54 = arith.constant 0 : index
    %c0_55 = arith.constant 0 : index
    %c8_56 = arith.constant 8 : index
    %c1_57 = arith.constant 1 : index
    %41 = vector.load %arg2[%c0_54, %c0_55, %c8_56, %c1_57] : memref<1x1x16x90xf32, #tpu.memory_space<vmem>>, vector<1x1x4x72xf32>
    %42 = vector.shape_cast %41 : vector<1x1x4x72xf32> to vector<4x72xf32>
    %43 = arith.maximumf %40, %42 : vector<4x72xf32>
    %c0_58 = arith.constant 0 : index
    %c0_59 = arith.constant 0 : index
    %c4_60 = arith.constant 4 : index
    %c9_61 = arith.constant 9 : index
    %44 = vector.load %arg2[%c0_58, %c0_59, %c4_60, %c9_61] : memref<1x1x16x90xf32, #tpu.memory_space<vmem>>, vector<1x1x4x72xf32>
    %45 = vector.shape_cast %44 : vector<1x1x4x72xf32> to vector<4x72xf32>
    %46 = arith.maximumf %43, %45 : vector<4x72xf32>
    %c0_62 = arith.constant 0 : index
    %c0_63 = arith.constant 0 : index
    %c0_64 = arith.constant 0 : index
    %c10_65 = arith.constant 10 : index
    %47 = vector.load %arg2[%c0_62, %c0_63, %c0_64, %c10_65] : memref<1x1x16x90xf32, #tpu.memory_space<vmem>>, vector<1x1x4x72xf32>
    %48 = vector.shape_cast %47 : vector<1x1x4x72xf32> to vector<4x72xf32>
    %49 = arith.maximumf %46, %48 : vector<4x72xf32>
    %c4_66 = arith.constant 4 : index
    %c0_67 = arith.constant 0 : index
    %50 = vector.load %arg4[%c4_66, %c0_67] : memref<8x3xf32, #tpu.memory_space<vmem>>, vector<4x1xf32>
    %51 = vector.broadcast %50 : vector<4x1xf32> to vector<4x72xf32>
    %52 = arith.mulf %49, %51 : vector<4x72xf32>
    %c4_68 = arith.constant 4 : index
    %c1_69 = arith.constant 1 : index
    %53 = vector.load %arg4[%c4_68, %c1_69] : memref<8x3xf32, #tpu.memory_space<vmem>>, vector<4x1xf32>
    %54 = vector.broadcast %53 : vector<4x1xf32> to vector<4x72xf32>
    %55 = arith.addf %52, %54 : vector<4x72xf32>
    %cst_70 = arith.constant 0.000000e+00 : f32
    %56 = vector.broadcast %cst_70 : f32 to vector<4x72xf32>
    %57 = arith.cmpf ogt, %55, %56 : vector<4x72xf32>
    %c4_71 = arith.constant 4 : index
    %c2_72 = arith.constant 2 : index
    %58 = vector.load %arg4[%c4_71, %c2_72] : memref<8x3xf32, #tpu.memory_space<vmem>>, vector<4x1xf32>
    %59 = vector.broadcast %58 : vector<4x1xf32> to vector<4x72xf32>
    %60 = arith.mulf %55, %59 : vector<4x72xf32>
    %61 = arith.select %57, %55, %60 : vector<4x72xi1>, vector<4x72xf32>
    %62 = tpu.concatenate %38, %61 in 0 : vector<4x72xf32>, vector<4x72xf32> -> vector<8x72xf32>
    %63 = vector.extract_strided_slice %62 {offsets = [0, 0], sizes = [8, 8], strides = [1, 1]} : vector<8x72xf32> to vector<8x8xf32>
    %c0_73 = arith.constant 0 : index
    %c0_74 = arith.constant 0 : index
    %c0_75 = arith.constant 0 : index
    %c0_76 = arith.constant 0 : index
    %c0_77 = arith.constant 0 : index
    %64 = vector.load %arg5[%c0_73, %c0_74, %c0_75, %c0_76, %c0_77] : memref<1x8x1x8x8xf32, #tpu.memory_space<vmem>>, vector<1x8x1x1x8xf32>
    %65 = vector.shape_cast %64 : vector<1x8x1x1x8xf32> to vector<8x8xf32>
    %66 = vector.shape_cast %63 : vector<8x8xf32> to vector<1x8x1x1x8xf32>
    tpu.vector_store %arg5[%c0_73, %c0_74, %c0_75, %c0_76, %c0_77], %66 {strides = array<i32>} : memref<1x8x1x8x8xf32, #tpu.memory_space<vmem>>, vector<1x8x1x1x8xf32>,
    %67 = vector.extract_strided_slice %62 {offsets = [0, 9], sizes = [8, 8], strides = [1, 1]} : vector<8x72xf32> to vector<8x8xf32>
    %c0_78 = arith.constant 0 : index
    %c0_79 = arith.constant 0 : index
    %c0_80 = arith.constant 0 : index
    %c1_81 = arith.constant 1 : index
    %c0_82 = arith.constant 0 : index
    %68 = vector.load %arg5[%c0_78, %c0_79, %c0_80, %c1_81, %c0_82] : memref<1x8x1x8x8xf32, #tpu.memory_space<vmem>>, vector<1x8x1x1x8xf32>
    %69 = vector.shape_cast %68 : vector<1x8x1x1x8xf32> to vector<8x8xf32>
    %70 = vector.shape_cast %67 : vector<8x8xf32> to vector<1x8x1x1x8xf32>
    tpu.vector_store %arg5[%c0_78, %c0_79, %c0_80, %c1_81, %c0_82], %70 {strides = array<i32>} : memref<1x8x1x8x8xf32, #tpu.memory_space<vmem>>, vector<1x8x1x1x8xf32>,
    %71 = vector.extract_strided_slice %62 {offsets = [0, 18], sizes = [8, 8], strides = [1, 1]} : vector<8x72xf32> to vector<8x8xf32>
    %c0_83 = arith.constant 0 : index
    %c0_84 = arith.constant 0 : index
    %c0_85 = arith.constant 0 : index
    %c2_86 = arith.constant 2 : index
    %c0_87 = arith.constant 0 : index
    %72 = vector.load %arg5[%c0_83, %c0_84, %c0_85, %c2_86, %c0_87] : memref<1x8x1x8x8xf32, #tpu.memory_space<vmem>>, vector<1x8x1x1x8xf32>
    %73 = vector.shape_cast %72 : vector<1x8x1x1x8xf32> to vector<8x8xf32>
    %74 = vector.shape_cast %71 : vector<8x8xf32> to vector<1x8x1x1x8xf32>
    tpu.vector_store %arg5[%c0_83, %c0_84, %c0_85, %c2_86, %c0_87], %74 {strides = array<i32>} : memref<1x8x1x8x8xf32, #tpu.memory_space<vmem>>, vector<1x8x1x1x8xf32>,
    %75 = vector.extract_strided_slice %62 {offsets = [0, 27], sizes = [8, 8], strides = [1, 1]} : vector<8x72xf32> to vector<8x8xf32>
    %c0_88 = arith.constant 0 : index
    %c0_89 = arith.constant 0 : index
    %c0_90 = arith.constant 0 : index
    %c3 = arith.constant 3 : index
    %c0_91 = arith.constant 0 : index
    %76 = vector.load %arg5[%c0_88, %c0_89, %c0_90, %c3, %c0_91] : memref<1x8x1x8x8xf32, #tpu.memory_space<vmem>>, vector<1x8x1x1x8xf32>
    %77 = vector.shape_cast %76 : vector<1x8x1x1x8xf32> to vector<8x8xf32>
    %78 = vector.shape_cast %75 : vector<8x8xf32> to vector<1x8x1x1x8xf32>
    tpu.vector_store %arg5[%c0_88, %c0_89, %c0_90, %c3, %c0_91], %78 {strides = array<i32>} : memref<1x8x1x8x8xf32, #tpu.memory_space<vmem>>, vector<1x8x1x1x8xf32>,
    %79 = vector.extract_strided_slice %62 {offsets = [0, 36], sizes = [8, 8], strides = [1, 1]} : vector<8x72xf32> to vector<8x8xf32>
    %c0_92 = arith.constant 0 : index
    %c0_93 = arith.constant 0 : index
    %c0_94 = arith.constant 0 : index
    %c4_95 = arith.constant 4 : index
    %c0_96 = arith.constant 0 : index
    %80 = vector.load %arg5[%c0_92, %c0_93, %c0_94, %c4_95, %c0_96] : memref<1x8x1x8x8xf32, #tpu.memory_space<vmem>>, vector<1x8x1x1x8xf32>
    %81 = vector.shape_cast %80 : vector<1x8x1x1x8xf32> to vector<8x8xf32>
    %82 = vector.shape_cast %79 : vector<8x8xf32> to vector<1x8x1x1x8xf32>
    tpu.vector_store %arg5[%c0_92, %c0_93, %c0_94, %c4_95, %c0_96], %82 {strides = array<i32>} : memref<1x8x1x8x8xf32, #tpu.memory_space<vmem>>, vector<1x8x1x1x8xf32>,
    %83 = vector.extract_strided_slice %62 {offsets = [0, 45], sizes = [8, 8], strides = [1, 1]} : vector<8x72xf32> to vector<8x8xf32>
    %c0_97 = arith.constant 0 : index
    %c0_98 = arith.constant 0 : index
    %c0_99 = arith.constant 0 : index
    %c5 = arith.constant 5 : index
    %c0_100 = arith.constant 0 : index
    %84 = vector.load %arg5[%c0_97, %c0_98, %c0_99, %c5, %c0_100] : memref<1x8x1x8x8xf32, #tpu.memory_space<vmem>>, vector<1x8x1x1x8xf32>
    %85 = vector.shape_cast %84 : vector<1x8x1x1x8xf32> to vector<8x8xf32>
    %86 = vector.shape_cast %83 : vector<8x8xf32> to vector<1x8x1x1x8xf32>
    tpu.vector_store %arg5[%c0_97, %c0_98, %c0_99, %c5, %c0_100], %86 {strides = array<i32>} : memref<1x8x1x8x8xf32, #tpu.memory_space<vmem>>, vector<1x8x1x1x8xf32>,
    %87 = vector.extract_strided_slice %62 {offsets = [0, 54], sizes = [8, 8], strides = [1, 1]} : vector<8x72xf32> to vector<8x8xf32>
    %c0_101 = arith.constant 0 : index
    %c0_102 = arith.constant 0 : index
    %c0_103 = arith.constant 0 : index
    %c6 = arith.constant 6 : index
    %c0_104 = arith.constant 0 : index
    %88 = vector.load %arg5[%c0_101, %c0_102, %c0_103, %c6, %c0_104] : memref<1x8x1x8x8xf32, #tpu.memory_space<vmem>>, vector<1x8x1x1x8xf32>
    %89 = vector.shape_cast %88 : vector<1x8x1x1x8xf32> to vector<8x8xf32>
    %90 = vector.shape_cast %87 : vector<8x8xf32> to vector<1x8x1x1x8xf32>
    tpu.vector_store %arg5[%c0_101, %c0_102, %c0_103, %c6, %c0_104], %90 {strides = array<i32>} : memref<1x8x1x8x8xf32, #tpu.memory_space<vmem>>, vector<1x8x1x1x8xf32>,
    %91 = vector.extract_strided_slice %62 {offsets = [0, 63], sizes = [8, 8], strides = [1, 1]} : vector<8x72xf32> to vector<8x8xf32>
    %c0_105 = arith.constant 0 : index
    %c0_106 = arith.constant 0 : index
    %c0_107 = arith.constant 0 : index
    %c7 = arith.constant 7 : index
    %c0_108 = arith.constant 0 : index
    %92 = vector.load %arg5[%c0_105, %c0_106, %c0_107, %c7, %c0_108] : memref<1x8x1x8x8xf32, #tpu.memory_space<vmem>>, vector<1x8x1x1x8xf32>
    %93 = vector.shape_cast %92 : vector<1x8x1x1x8xf32> to vector<8x8xf32>
    %94 = vector.shape_cast %91 : vector<8x8xf32> to vector<1x8x1x1x8xf32>
    tpu.vector_store %arg5[%c0_105, %c0_106, %c0_107, %c7, %c0_108], %94 {strides = array<i32>} : memref<1x8x1x8x8xf32, #tpu.memory_space<vmem>>, vector<1x8x1x1x8xf32>,
    return
  }
  func.func @transform_0(%arg0: i32, %arg1: i32) -> (i32, i32, i32, i32) {
    %c0_i32 = arith.constant 0 : i32
    %c0_i32_0 = arith.constant 0 : i32
    %c0_i32_1 = arith.constant 0 : i32
    return %arg0, %arg1, %c0_i32, %c0_i32_0 : i32, i32, i32, i32
  }
  func.func @transform_1(%arg0: i32, %arg1: i32) -> (i32, i32) {
    %c0_i32 = arith.constant 0 : i32
    %c0_i32_0 = arith.constant 0 : i32
    %c0_i32_1 = arith.constant 0 : i32
    return %c0_i32, %c0_i32_0 : i32, i32
  }
  func.func @transform_2(%arg0: i32, %arg1: i32) -> (i32, i32) {
    %c0_i32 = arith.constant 0 : i32
    %c0_i32_0 = arith.constant 0 : i32
    %c0_i32_1 = arith.constant 0 : i32
    return %c0_i32, %c0_i32_0 : i32, i32
  }
  func.func @transform_3(%arg0: i32, %arg1: i32) -> (i32, i32, i32, i32, i32) {
    %c0_i32 = arith.constant 0 : i32
    %c0_i32_0 = arith.constant 0 : i32
    %c0_i32_1 = arith.constant 0 : i32
    %c0_i32_2 = arith.constant 0 : i32
    return %arg0, %c0_i32, %arg1, %c0_i32_0, %c0_i32_1 : i32, i32, i32, i32, i32
  }
}

</mosaic_0001>

<bundles_post_ra>
// kernel: tpu_custom_call.1
= control target key start
LH: loop header
LB: loop body
LE: loop exit
PB: predicated region body
PF: predicated region fallthrough
CT: control target
= control target key end

     0   :  { %8 = vsyncpa [#allocation4], 0  ;;  %s1481_s0 = inlined_call_operand.hbm [shape: f32[2,1,16,90], index: 0, kind: input, shape index: {}]   ;;  %s1482_s1 = inlined_call_operand.vmem [shape: f32[4,36], index: 1, kind: input, shape index: {}]   ;;  %s1483_s2 = inlined_call_operand.vmem [shape: f32[8,3], index: 2, kind: input, shape index: {}]   ;;  %s1484_s3 = inlined_call_operand.hbm [shape: f32[2,8,1,8,8], index: 3, kind: output, shape index: {}]  }
   0x1   :  { %10 = vsyncpa [#allocation4 + $0x1], 0 }
   0x2   :  { %11 = vsyncpa [#allocation5], 0 }
   0x3   :  { %13 = vsyncpa [#allocation5 + $0x1], 0  ;;  %s1083_s12 = smov 0   ;;  %s1085_s13 = smov 0  }
   0x4   :  { %s1087_s14 = smov 0   ;;  %s1089_s15 = smov 0  }
   0x5   :  { %s1091_s16 = smov 0   ;;  %s1093_s17 = smov 0  }
   0x6 LB: > { %s809_s18 = sadd.s32 4294967295, %s1040_s17   ;;  %s810_s19 = sadd.s32 4294967294, %s1040_s17   ;;  %s1040_s17 = sphi %s1093_s17, %s19_s17   ;;  %s1036_s16 = sphi %s1091_s16, %s1495_s16   ;;  %s1032_s15 = sphi %s1089_s15, %s1494_s15   ;;  %s1028_s14 = sphi %s1087_s14, %s1493_s14   ;;  %s1024_s13 = sphi %s1085_s13, %s1492_s13   ;;  %s1020_s12 = sphi %s1083_s12, %s1491_s12  }
   0x7   : > { %s31_s20 = sadd.s32 1, %s1036_s16  ;;  %s40_s21 = sadd.s32 1, %s1028_s14 }
   0x8   : > { %p33_p0 = scmp.ge.s32.totalorder %s31_s20, 2  ;;  %p47_p1 = scmp.ne.s32.totalorder %s1028_s14, %s1024_s13 }
   0x9   : > { %p48_p2 = scmp.eq.s32.totalorder %s1040_s17, 0  ;;  %p53_p3 = scmp.ne.s32.totalorder %s1024_s13, %s1020_s12 }
   0xa   : > { %s1497_s20 = smov (%p33_p0, %s31_s20), 0  ;;  %p54_p5 = scmp.eq.s32.totalorder %s809_s18, 0 }
   0xb   : > { %p1124_p4 = por %p48_p2, %p47_p1  ;;  %s35_s23 = ssub.s32 %s1036_s16, %s1497_s20 }
   0xc   : > { %p121_p6 = scmp.eq.s32.totalorder %s809_s18, 1  ;;  %p38_p7 = scmp.eq.s32.totalorder %s35_s23, 0 }
   0xd   : > { %p1130_p8 = por %p54_p5, %p53_p3  ;;  %p127_p10 = scmp.eq.s32.totalorder %s810_s19, 1 }
   0xe   : > { %p1134_p9 = por %p121_p6, %p47_p1  ;;  %p859_p13 = scmp.lt.s32.totalorder %s1040_s17, 2 }
   0xf   : > { %s1139_s26 = scalar_select %p38_p7, %s1028_s14, %s40_s21  }
  0x10   : > { %p1141_p11 = por %p127_p10, %p53_p3  ;;  %s153_s28 = sand.u32 1, %s1028_s14  }
  0x11   : > { %s813_s29 = sshll.u32 %s153_s28, 4  ;;  %s826_s30 = sshll.u32 %s1036_s16, 8 }
  0x12   : > { %s165_s6 = scalar_lea.hbm %s1481_s0, %s826_s30  ;;  %s157_s7 = scalar_lea.vmem [#allocation3], %s813_s29 }
  0x13   : > { %s166_s8 = sshll.u32 %s157_s7, 4  ;;  %p1154_p0 = pnand %p859_p13, %p1124_p4  ;;  %s167_s8 = int_to_ptr.vmem [resolvable:$true] %s166_s8 }
  0x14   : > { %p816_p1 = scmp.ge.s32.totalorder %s1040_s17, 1  ;;  %s154_s10 = scalar_lea.sflag [#allocation4], %s153_s28 }
  0x15   : > { %p934_p2 = pneg %p1154_p0  ;;  %s945_s11 = scalar_lea.vmem %s167_s8, 256 }
  0x16   : > { %p946_p3 = scmp.ne.s32.totalorder %s167_s8, %s945_s11  ;;  %s1042_s18 = smov [#allocation3]  }
  0x17   : > { %s950_s19 = sshll.u32 %s1042_s18, 4  ;;  %s951_s19 = int_to_ptr.vmem [resolvable:$false] %s950_s19 }
  0x18   : > { %p948_p5 = pnand %p946_p3, %p934_p2  ;;  %s952_s21 = scalar_lea.vmem %s951_s19, 512 }
  0x19   : > { %p953_p7 = scmp.lt.s32.totalorder %s167_s8, %s951_s19  ;;  %p954_p10 = scmp.lt.s32.totalorder %s952_s21, %s945_s11 }
  0x1a   : > { %p949_p6 = pneg %p948_p5 }
  0x1b   : > { %p955_p12 = por %p954_p10, %p953_p7 }
  0x1d   : > { %p956_p4 = pnand %p955_p12, %p949_p6 }
  0x1f   : > { %959 = shalt.err (!%p956_p4)
}
  0x20   : > { %s1043_s22 = smov 128   ;;  %s1044_s23 = smov 8  }
  0x21   : > { %854 = dma.hbm_to_vmem [thread:$0]  (!%p1154_p0), %s165_s6, 256, %s167_s8, %s154_s10, %s1043_s22, %s1043_s22, %s1044_s23  }
  0x22   : > { %p174_p13 = scmp.lt.s32.totalorder %s1040_s17, 3 }
  0x24   : > { %p175_p2 = pnand %p816_p1, %p174_p13 }
  0x25   : > { %s1167_s28 = sand.u32 (!%p175_p2), 1, %s1024_s13  }
  0x26   : > { %178 = sbr.rel (%p175_p2) target bundleno = 625 (0x271), region = 32  ;;  %s817_s29 = sshll.u32 (!%p175_p2), %s1167_s28, 4 }
  0x27   : > { %s181_s30 = scalar_lea.sflag (!%p175_p2), [#allocation4], %s1167_s28  ;;  %s1171_s4 = scalar_lea.vmem (!%p175_p2), [#allocation3], %s817_s29 }
  0x2b   : > { %1011 = dma.done.wait (%p1130_p8), %s181_s30, 256  }
  0x2c   : > { %1013 = vsyncadd (%p1130_p8), %s181_s30, 4294967040  ;;  %v1045_v0 = vmov 0.0   ;;  %v240_v1 = vld [vmem:[%s1171_s4] sm:$0xf]  ;;  %v234_v2 = vld [vmem:[%s1171_s4 + $0x4] sm:$0xf]  ;;  %v390_v43 = vlaneseq }
  0x2d   : > { %834 = vmatprep.subr.mxu0 %v1045_v0  ;;  %s1046_s5 = smov 118   ;;  %s1047_s6 = smov 119   ;;  %v228_v3 = vld [vmem:[%s1171_s4] sm:$0xf]  ;;  %v222_v4 = vld [vmem:[%s1171_s4 + $0x8] sm:$0xf] }
  0x2e   : > { %242 = vrot.lane.b32.xlu0 %v240_v1, %s1046_s5  ;;  %236 = vrot.lane.b32.xlu1 %v234_v2, %s1047_s6  ;;  %vm208_vm0 = vcmask 584704   ;;  %v220_v5 = vld [vmem:[%s1171_s4 + $0xc] sm:$0xf]  ;;  %v218_v6 = vld [vmem:[%s1171_s4 + $0x8] sm:$0xf]  ;;  %s1048_s24 = smov 127  }
  0x2f   : > { %v207_v7 = vld [vmem:[%s1171_s4] sm:$0xf]  ;;  %221 = vst.msk [vmem:[#allocation2 + $0x10] sm:$0xf] %vm208_vm0, %v220_v5  ;;  %219 = vst.msk [vmem:[#allocation2 + $0xc] sm:$0xf] %vm208_vm0, %v218_v6 }
  0x30   : > { %209 = vst.msk [vmem:[#allocation2] sm:$0xf] %vm208_vm0, %v207_v7  ;;  %v210_v8 = vld [vmem:[%s1171_s4 + $0x4] sm:$0xf]  ;;  %v212_v9 = vld [vmem:[%s1171_s4] sm:$0xf] }
  0x31   : > { %211 = vst.msk [vmem:[#allocation2 + $0x4] sm:$0xf] %vm208_vm0, %v210_v8  ;;  %vm1049_vm1 = vmmov 0   ;;  %v344_v10 = vld [vmem:[%s1171_s4 + $0x8] sm:$0xf]  ;;  %v1050_v11 = vmov 0  }
  0x32   : > { %230 = vrot.lane.b32.xlu0 %v228_v3, %s1047_s6  ;;  %224 = vrot.lane.b32.xlu1 %v222_v4, %s1048_s24  ;;  %v1051_v12 = vmov 1   ;;  %v362_v13 = vld [vmem:[%s1483_s2 + $0x4] sm:$0xf]  ;;  %v350_v14 = vld [vmem:[%s1171_s4 + $0x4] sm:$0xf]  ;;  %v1052_v16 = vmov 2  }
  0x33   : > { %844 = vmatprep.mubr.msk.f32.mxu0 %vm1049_vm1, %v1045_v0  ;;  %928 = vset.pattern.permute.xlu0 %v1050_v11  ;;  %v356_v15 = vld [vmem:[%s1171_s4] sm:$0xf]  ;;  %v252_v17 = vld [vmem:[%s1483_s2] sm:$0xf]  ;;  %vm262_vm2 = vcmask 1043456   ;;  %vm258_vm3 = vcmask 293888  }
  0x34   : > { %929 = vset.pattern.permute.xlu1 %v1051_v12  ;;  %v246_v28 = vld [vmem:[%s1482_s1] sm:$0xf]  ;;  %v343_v30 = vld [vmem:[%s1171_s4 + $0xc] sm:$0xf]  ;;  %v1053_v41 = vmov 1966171168  }
  0x35   : > { %v388_v42 = vunpack.c.l.s4 %v1053_v41  ;;  %v391_v47 = vshrl.u32 %v390_v43, 7  ;;  %s818_s19 = sshll.u32 %s1167_s28, 6  ;;  %vm443_vm6 = vcmask 57344   ;;  %s1054_s22 = smov 110  }
  0x36   : > { %214 = vrot.lane.b32.xlu0 %v212_v9, %s1048_s24  ;;  %346 = vrot.lane.b32.xlu1 %v344_v10, %s1048_s24  ;;  %s1222_s21 = scalar_lea.vmem [#allocation6], %s818_s19  ;;  %s1055_s23 = smov 101  }
  0x37   : > { %v389_v46 = vunpack.c.0.s8 %v388_v42  ;;  %v454_v60 = vsub.s32 0, %v391_v47  ;;  %s1056_s29 = smov 92   ;;  %s1057_s30 = smov 83  }
  0x38   : > { %v247_v27 = vld [vmem:[#allocation2] sm:$0xff]  ;;  %s1058_s4 = smov 74   ;;  %s723_s24 = sshll.u32 %s1222_s21, 4  ;;  %s1429_s24 = int_to_ptr.vmem [resolvable:$true] %s723_s24 }
  0x39   : > { %v392_v53 = vsub.s32 %v389_v46, %v391_v47  ;;  %s960_s10 = scalar_lea.vmem %s1429_s24, 1024  ;;  %s1060_s11 = smov [#allocation6]  }
  0x3a   : > { %365 = vperm.xlu0 %928, %v362_v13   ;;  %352 = vrot.lane.b32.xlu1 %v350_v14, %s1047_s6  ;;  %p961_p8 = scmp.ne.s32.totalorder %s1429_s24, %s960_s10  ;;  %s964_s18 = sshll.u32 %s1060_s11, 4  ;;  %s965_s18 = int_to_ptr.vmem [resolvable:$false] %s964_s18 }
  0x3b   : > { %s966_s19 = scalar_lea.vmem %s965_s18, 2048  ;;  %p967_p1 = scmp.lt.s32.totalorder %s1429_s24, %s965_s18 }
  0x3c   : > { %p962_p12 = pnand %p961_p8, %p1134_p9  ;;  %p968_p3 = scmp.lt.s32.totalorder %s966_s19, %s960_s10 }
  0x3e   : > { %358 = vrot.lane.b32.xlu0 %v356_v15, %s1046_s5  ;;  %370 = vperm.xlu1 %929, %v362_v13   ;;  %s1059_s5 = smov 65   ;;  %p963_p0 = pneg %p962_p12 }
  0x3f   : > { %930 = vset.pattern.permute.xlu0 %v1052_v16  ;;  %p969_p5 = por %p968_p3, %p967_p1 }
  0x41   : > { %p970_p6 = pnand %p969_p5, %p963_p0 }
  0x42   : > { %376 = vperm.xlu0 %930, %v362_v13   ;;  %255 = vperm.xlu1 %929, %v252_v17  }
  0x46   : > { %931 = vset.pattern.permute.xlu1 %v1052_v16 }
  0x47   : > { %338 = vperm.xlu1 %931, %v252_v17  }
  0xa0   : > { %v243_v18 = vpop.permute.xlu0 %242  ;;  %v237_v19 = vpop.permute.xlu1 %236 }
  0xa1   : > { %245 = vst.msk [vmem:[#allocation2 + $0x20] sm:$0xf] %vm208_vm0, %v243_v18  ;;  %239 = vst.msk [vmem:[#allocation2 + $0x1c] sm:$0xf] %vm208_vm0, %v237_v19 }
  0xa4   : > { %v231_v20 = vpop.permute.xlu0 %230  ;;  %v225_v21 = vpop.permute.xlu1 %224 }
  0xa5   : > { %233 = vst.msk [vmem:[#allocation2 + $0x18] sm:$0xf] %vm208_vm0, %v231_v20  ;;  %227 = vst.msk [vmem:[#allocation2 + $0x14] sm:$0xf] %vm208_vm0, %v225_v21 }
  0xa8   : > { %v215_v22 = vpop.permute.xlu0 %214  ;;  %v251_v23 = vld [vmem:[#allocation2 + $0x20] sm:$0xf]  ;;  %v347_v29 = vpop.permute.xlu1 %346 }
  0xa9   : > { %217 = vst.msk [vmem:[#allocation2 + $0x8] sm:$0xf] %vm208_vm0, %v215_v22  ;;  %835 = vmatpush3.msk.msra.mxu0 %vm262_vm2, %v251_v23  ;;  %v349_v32 = vmax.f32 %v343_v30, %v347_v29 }
  0xaa   : > { %836 = vmatprep.subr.mxu0 %v1045_v0 }
  0xac   : > { %v250_v24 = vld [vmem:[#allocation2 + $0x18] sm:$0xff]  ;;  %v249_v25 = vld [vmem:[#allocation2 + $0x10] sm:$0xff]  ;;  %v353_v33 = vpop.permute.xlu1 %352 }
  0xad   : > { %837 = vmatpush3.msra.mxu0 %v250_v24  ;;  %v355_v34 = vmax.f32 %v349_v32, %v353_v33 }
  0xae   : > { %838 = vmatprep.subr.mxu0 %v1045_v0 }
  0xaf   : > { %839 = vmatpush3.msra.mxu0 %v249_v25 }
  0xb0   : > { %840 = vmatprep.subr.mxu0 %v1045_v0  ;;  %v248_v26 = vld [vmem:[#allocation2 + $0x8] sm:$0xff] }
  0xb1   : > { %841 = vmatpush3.msra.mxu0 %v248_v26 }
  0xb2   : > { %842 = vmatprep.subr.mxu0 %v1045_v0 }
  0xb3   : > { %843 = vmatpush3.msra.mxu0 %v247_v27 }
  0xb4   : > { %845 = vmatmul.mubr.msk.f32.vlgmr.msra.gmra.mxu0 %vm258_vm3, %v246_v28 }
  0xb5   : > { %v366_v31 = vpop.permute.xlu0 %365 }
  0xb9   : > { %v359_v35 = vpop.permute.xlu0 %358  ;;  %v371_v38 = vpop.permute.xlu1 %370 }
  0xba   : > { %v361_v36 = vmax.f32 %v355_v34, %v359_v35 }
  0xbc   : > { %v368_v37 = vmul.f32 %v366_v31, %v361_v36 }
  0xbd   : > { %v377_v40 = vpop.permute.xlu0 %376  ;;  %v256_v44 = vpop.permute.xlu1 %255 }
  0xbe   : > { %v373_v39 = vadd.f32 %v371_v38, %v368_v37 }
  0xc0   : > { %v379_v45 = vmul.f32 %v377_v40, %v373_v39  ;;  %vm374_vm4 = vcmp.gt.f32.partialorder %v373_v39, 0.0 }
  0xc2   : > { %v339_v49 = vpop.permute.xlu1 %338  ;;  %v380_v50 = vsel %vm374_vm4, %v373_v39, %v379_v45 }
  0xc3   : > { %v382_v55 = vrot.slane %v380_v50, 4 }
 0x174   : > { %v332_v48 = vpop.f32.mrf.mxu0 }
 0x175   : > { %v333_v51 = vadd.f32 %v332_v48, %v256_v44 }
 0x176   : > { %v846_v52 = vpop.f32.mrf.mxu0 }
 0x177   : > { %vm336_vm5 = vcmp.gt.f32.partialorder %v333_v51, 0.0  ;;  %v341_v54 = vmul.f32 %v339_v49, %v333_v51 }
 0x179   : > { %v342_v56 = vsel %vm336_vm5, %v333_v51, %v341_v54 }
 0x17a   : > { %v384_v57 = vsel %vm262_vm2, %v342_v56, %v382_v55 }
 0x17b   : > { %v386_v58 = vcombine.high %v384_v57, %v384_v57  ;;  %v393_v59 = vrot.slane %v384_v57, %v392_v53 }
 0x17d   : > { %v400_v61 = vrot.slane %v386_v58, %v392_v53  ;;  %v401_v62 = vcombine.high %v393_v59, %v393_v59  ;;  %v409_v63 = vrot.slane %v393_v59, %v392_v53 }
 0x17f   : > { %v402_v0 = vcombine.high %v400_v61, %v400_v61  ;;  %v416_v1 = vrot.slane %v400_v61, %v392_v53  ;;  %v423_v2 = vrot.slane %v401_v62, %v392_v53  ;;  %v431_v3 = vcombine.high %v409_v63, %v409_v63  ;;  %444 = vst.msk [vmem:[%s1222_s21] sm:$0x1] %vm443_vm6, %v409_v63 }
 0x180   : > { %v455_v4 = vrot.slane %v409_v63, %v454_v60 }
 0x181   : > { %v430_v5 = vrot.slane %v402_v0, %v392_v53  ;;  %v432_v6 = vcombine.high %v416_v1, %v416_v1  ;;  %v433_v7 = vcombine.high %v423_v2, %v423_v2  ;;  %445 = vst.msk [vmem:[%s1222_s21 + $0x8] sm:$0x1] %vm443_vm6, %v423_v2  ;;  %446 = vst.msk [vmem:[%s1222_s21 + $0x10] sm:$0x1] %vm443_vm6, %v431_v3 }
 0x182   : > { %448 = vst.msk [vmem:[%s1222_s21 + $0x20] sm:$0x1] %vm443_vm6, %v416_v1  ;;  %v459_v8 = vrot.slane %v423_v2, %v454_v60  ;;  %484 = vrot.lane.b32.xlu1 %v455_v4, %s1047_s6  ;;  %v463_v12 = vrot.slane %v431_v3, %v454_v60  ;;  %v471_v14 = vrot.slane %v416_v1, %v454_v60 }
 0x183   : > { %v434_v9 = vcombine.high %v430_v5, %v430_v5  ;;  %447 = vst.msk [vmem:[%s1222_s21 + $0x18] sm:$0x1] %vm443_vm6, %v433_v7  ;;  %449 = vst.msk [vmem:[%s1222_s21 + $0x28] sm:$0x1] %vm443_vm6, %v430_v5  ;;  %v1239_v10 = vrot.slane %v432_v6, %v454_v60  ;;  %v467_v13 = vrot.slane %v433_v7, %v454_v60 }
 0x184   : > { %450 = vst.msk [vmem:[%s1222_s21 + $0x30] sm:$0x1] %vm443_vm6, %v432_v6  ;;  %486 = vrot.lane.b32.xlu0 %v459_v8, %s1047_s6  ;;  %v475_v15 = vrot.slane %v430_v5, %v454_v60 }
 0x185   : > { %451 = vst.msk [vmem:[%s1222_s21 + $0x38] sm:$0x1] %vm443_vm6, %v434_v9  ;;  %v1244_v11 = vrot.slane %v434_v9, %v454_v60 }
 0x186   : > { %516 = vrot.lane.b32.xlu1 %v455_v4, %s1054_s22 }
 0x188   : > { %518 = vrot.lane.b32.xlu0 %v459_v8, %s1054_s22 }
 0x18a   : > { %548 = vrot.lane.b32.xlu1 %v455_v4, %s1055_s23 }
 0x18c   : > { %550 = vrot.lane.b32.xlu0 %v459_v8, %s1055_s23 }
 0x18e   : > { %580 = vrot.lane.b32.xlu1 %v455_v4, %s1056_s29 }
 0x190   : > { %582 = vrot.lane.b32.xlu0 %v459_v8, %s1056_s29 }
 0x192   : > { %612 = vrot.lane.b32.xlu1 %v455_v4, %s1057_s30 }
 0x194   : > { %614 = vrot.lane.b32.xlu0 %v459_v8, %s1057_s30 }
 0x196   : > { %644 = vrot.lane.b32.xlu1 %v455_v4, %s1058_s4 }
 0x198   : > { %646 = vrot.lane.b32.xlu0 %v459_v8, %s1058_s4 }
 0x19a   : > { %676 = vrot.lane.b32.xlu1 %v455_v4, %s1059_s5 }
 0x19c   : > { %678 = vrot.lane.b32.xlu0 %v459_v8, %s1059_s5 }
 0x19e   : > { %488 = vrot.lane.b32.xlu1 %v463_v12, %s1047_s6 }
 0x1a0   : > { %490 = vrot.lane.b32.xlu0 %v467_v13, %s1047_s6 }
 0x1a2   : > { %492 = vrot.lane.b32.xlu1 %v471_v14, %s1047_s6 }
 0x1a4   : > { %494 = vrot.lane.b32.xlu0 %v475_v15, %s1047_s6 }
 0x1a6   : > { %520 = vrot.lane.b32.xlu1 %v463_v12, %s1054_s22 }
 0x1a8   : > { %522 = vrot.lane.b32.xlu0 %v467_v13, %s1054_s22 }
 0x1aa   : > { %524 = vrot.lane.b32.xlu1 %v471_v14, %s1054_s22 }
 0x1ac   : > { %526 = vrot.lane.b32.xlu0 %v475_v15, %s1054_s22 }
 0x1ae   : > { %552 = vrot.lane.b32.xlu1 %v463_v12, %s1055_s23 }
 0x1b0   : > { %554 = vrot.lane.b32.xlu0 %v467_v13, %s1055_s23 }
 0x1b2   : > { %556 = vrot.lane.b32.xlu1 %v471_v14, %s1055_s23 }
 0x1b4   : > { %558 = vrot.lane.b32.xlu0 %v475_v15, %s1055_s23 }
 0x1b6   : > { %584 = vrot.lane.b32.xlu1 %v463_v12, %s1056_s29 }
 0x1b8   : > { %586 = vrot.lane.b32.xlu0 %v467_v13, %s1056_s29 }
 0x1ba   : > { %588 = vrot.lane.b32.xlu1 %v471_v14, %s1056_s29 }
 0x1bc   : > { %590 = vrot.lane.b32.xlu0 %v475_v15, %s1056_s29 }
 0x1be   : > { %616 = vrot.lane.b32.xlu1 %v463_v12, %s1057_s30 }
 0x1c0   : > { %618 = vrot.lane.b32.xlu0 %v467_v13, %s1057_s30 }
 0x1c2   : > { %620 = vrot.lane.b32.xlu1 %v471_v14, %s1057_s30 }
 0x1c4   : > { %622 = vrot.lane.b32.xlu0 %v475_v15, %s1057_s30 }
 0x1c6   : > { %648 = vrot.lane.b32.xlu1 %v463_v12, %s1058_s4 }
 0x1c8   : > { %650 = vrot.lane.b32.xlu0 %v467_v13, %s1058_s4 }
 0x1ca   : > { %652 = vrot.lane.b32.xlu1 %v471_v14, %s1058_s4 }
 0x1cc   : > { %654 = vrot.lane.b32.xlu0 %v475_v15, %s1058_s4 }
 0x1ce   : > { %680 = vrot.lane.b32.xlu1 %v463_v12, %s1059_s5 }
 0x1d0   : > { %682 = vrot.lane.b32.xlu0 %v467_v13, %s1059_s5 }
 0x1d2   : > { %684 = vrot.lane.b32.xlu1 %v471_v14, %s1059_s5 }
 0x1d4   : > { %686 = vrot.lane.b32.xlu0 %v475_v15, %s1059_s5 }
 0x1d6   : > { %496 = vrot.lane.b32.xlu1 %v1239_v10, %s1047_s6 }
 0x1d8   : > { %498 = vrot.lane.b32.xlu0 %v1244_v11, %s1047_s6  ;;  %s827_s6 = sshll.u32 %s1032_s15, 10  ;;  %s709_s15 = scalar_lea.sflag [#allocation5], %s1167_s28 }
 0x1d9   : > { %s1427_s9 = scalar_lea.hbm %s1484_s3, %s827_s6 }
 0x1da   : > { %528 = vrot.lane.b32.xlu1 %v1239_v10, %s1054_s22 }
 0x1dc   : > { %530 = vrot.lane.b32.xlu0 %v1244_v11, %s1054_s22 }
 0x1de   : > { %560 = vrot.lane.b32.xlu1 %v1239_v10, %s1055_s23 }
 0x1e0   : > { %562 = vrot.lane.b32.xlu0 %v1244_v11, %s1055_s23 }
 0x1e2   : > { %592 = vrot.lane.b32.xlu1 %v1239_v10, %s1056_s29 }
 0x1e4   : > { %594 = vrot.lane.b32.xlu0 %v1244_v11, %s1056_s29 }
 0x1e6   : > { %624 = vrot.lane.b32.xlu1 %v1239_v10, %s1057_s30 }
 0x1e8   : > { %626 = vrot.lane.b32.xlu0 %v1244_v11, %s1057_s30 }
 0x1ea   : > { %656 = vrot.lane.b32.xlu1 %v1239_v10, %s1058_s4 }
 0x1ec   : > { %658 = vrot.lane.b32.xlu0 %v1244_v11, %s1058_s4 }
 0x1ee   : > { %688 = vrot.lane.b32.xlu1 %v1239_v10, %s1059_s5 }
 0x1f0   : > { %690 = vrot.lane.b32.xlu0 %v1244_v11, %s1059_s5 }
 0x1f4   : > { %v485_v16 = vpop.permute.xlu1 %484 }
 0x1f5   : > { %508 = vst.msk [vmem:[%s1222_s21 + $0x1] sm:$0x1] %vm443_vm6, %v485_v16 }
 0x1f6   : > { %v487_v17 = vpop.permute.xlu0 %486 }
 0x1f7   : > { %509 = vst.msk [vmem:[%s1222_s21 + $0x9] sm:$0x1] %vm443_vm6, %v487_v17 }
 0x1f8   : > { %v517_v18 = vpop.permute.xlu1 %516 }
 0x1f9   : > { %540 = vst.msk [vmem:[%s1222_s21 + $0x2] sm:$0x1] %vm443_vm6, %v517_v18 }
 0x1fa   : > { %v519_v19 = vpop.permute.xlu0 %518 }
 0x1fb   : > { %541 = vst.msk [vmem:[%s1222_s21 + $0xa] sm:$0x1] %vm443_vm6, %v519_v19 }
 0x1fc   : > { %v549_v20 = vpop.permute.xlu1 %548 }
 0x1fd   : > { %572 = vst.msk [vmem:[%s1222_s21 + $0x3] sm:$0x1] %vm443_vm6, %v549_v20 }
 0x1fe   : > { %v551_v21 = vpop.permute.xlu0 %550 }
 0x1ff   : > { %573 = vst.msk [vmem:[%s1222_s21 + $0xb] sm:$0x1] %vm443_vm6, %v551_v21 }
 0x200   : > { %v581_v22 = vpop.permute.xlu1 %580 }
 0x201   : > { %604 = vst.msk [vmem:[%s1222_s21 + $0x4] sm:$0x1] %vm443_vm6, %v581_v22 }
 0x202   : > { %v583_v23 = vpop.permute.xlu0 %582 }
 0x203   : > { %605 = vst.msk [vmem:[%s1222_s21 + $0xc] sm:$0x1] %vm443_vm6, %v583_v23 }
 0x204   : > { %v613_v24 = vpop.permute.xlu1 %612 }
 0x205   : > { %636 = vst.msk [vmem:[%s1222_s21 + $0x5] sm:$0x1] %vm443_vm6, %v613_v24 }
 0x206   : > { %v615_v25 = vpop.permute.xlu0 %614 }
 0x207   : > { %637 = vst.msk [vmem:[%s1222_s21 + $0xd] sm:$0x1] %vm443_vm6, %v615_v25 }
 0x208   : > { %v645_v26 = vpop.permute.xlu1 %644 }
 0x209   : > { %668 = vst.msk [vmem:[%s1222_s21 + $0x6] sm:$0x1] %vm443_vm6, %v645_v26 }
 0x20a   : > { %v647_v27 = vpop.permute.xlu0 %646 }
 0x20b   : > { %669 = vst.msk [vmem:[%s1222_s21 + $0xe] sm:$0x1] %vm443_vm6, %v647_v27 }
 0x20c   : > { %v677_v28 = vpop.permute.xlu1 %676 }
 0x20d   : > { %700 = vst.msk [vmem:[%s1222_s21 + $0x7] sm:$0x1] %vm443_vm6, %v677_v28 }
 0x20e   : > { %v679_v29 = vpop.permute.xlu0 %678 }
 0x20f   : > { %701 = vst.msk [vmem:[%s1222_s21 + $0xf] sm:$0x1] %vm443_vm6, %v679_v29 }
 0x210   : > { %v489_v30 = vpop.permute.xlu1 %488 }
 0x211   : > { %510 = vst.msk [vmem:[%s1222_s21 + $0x11] sm:$0x1] %vm443_vm6, %v489_v30 }
 0x212   : > { %v491_v31 = vpop.permute.xlu0 %490 }
 0x213   : > { %511 = vst.msk [vmem:[%s1222_s21 + $0x19] sm:$0x1] %vm443_vm6, %v491_v31 }
 0x214   : > { %v493_v32 = vpop.permute.xlu1 %492 }
 0x215   : > { %512 = vst.msk [vmem:[%s1222_s21 + $0x21] sm:$0x1] %vm443_vm6, %v493_v32 }
 0x216   : > { %v495_v33 = vpop.permute.xlu0 %494 }
 0x217   : > { %513 = vst.msk [vmem:[%s1222_s21 + $0x29] sm:$0x1] %vm443_vm6, %v495_v33 }
 0x218   : > { %v521_v34 = vpop.permute.xlu1 %520 }
 0x219   : > { %542 = vst.msk [vmem:[%s1222_s21 + $0x12] sm:$0x1] %vm443_vm6, %v521_v34 }
 0x21a   : > { %v523_v35 = vpop.permute.xlu0 %522 }
 0x21b   : > { %543 = vst.msk [vmem:[%s1222_s21 + $0x1a] sm:$0x1] %vm443_vm6, %v523_v35 }
 0x21c   : > { %v525_v36 = vpop.permute.xlu1 %524 }
 0x21d   : > { %544 = vst.msk [vmem:[%s1222_s21 + $0x22] sm:$0x1] %vm443_vm6, %v525_v36 }
 0x21e   : > { %v527_v37 = vpop.permute.xlu0 %526 }
 0x21f   : > { %545 = vst.msk [vmem:[%s1222_s21 + $0x2a] sm:$0x1] %vm443_vm6, %v527_v37 }
 0x220   : > { %v553_v38 = vpop.permute.xlu1 %552 }
 0x221   : > { %574 = vst.msk [vmem:[%s1222_s21 + $0x13] sm:$0x1] %vm443_vm6, %v553_v38 }
 0x222   : > { %v555_v39 = vpop.permute.xlu0 %554 }
 0x223   : > { %575 = vst.msk [vmem:[%s1222_s21 + $0x1b] sm:$0x1] %vm443_vm6, %v555_v39 }
 0x224   : > { %v557_v40 = vpop.permute.xlu1 %556 }
 0x225   : > { %576 = vst.msk [vmem:[%s1222_s21 + $0x23] sm:$0x1] %vm443_vm6, %v557_v40 }
 0x226   : > { %v559_v41 = vpop.permute.xlu0 %558 }
 0x227   : > { %577 = vst.msk [vmem:[%s1222_s21 + $0x2b] sm:$0x1] %vm443_vm6, %v559_v41 }
 0x228   : > { %v585_v42 = vpop.permute.xlu1 %584 }
 0x229   : > { %606 = vst.msk [vmem:[%s1222_s21 + $0x14] sm:$0x1] %vm443_vm6, %v585_v42 }
 0x22a   : > { %v587_v43 = vpop.permute.xlu0 %586 }
 0x22b   : > { %607 = vst.msk [vmem:[%s1222_s21 + $0x1c] sm:$0x1] %vm443_vm6, %v587_v43 }
 0x22c   : > { %v589_v44 = vpop.permute.xlu1 %588 }
 0x22d   : > { %608 = vst.msk [vmem:[%s1222_s21 + $0x24] sm:$0x1] %vm443_vm6, %v589_v44 }
 0x22e   : > { %v591_v45 = vpop.permute.xlu0 %590 }
 0x22f   : > { %609 = vst.msk [vmem:[%s1222_s21 + $0x2c] sm:$0x1] %vm443_vm6, %v591_v45 }
 0x230   : > { %v617_v46 = vpop.permute.xlu1 %616 }
 0x231   : > { %638 = vst.msk [vmem:[%s1222_s21 + $0x15] sm:$0x1] %vm443_vm6, %v617_v46 }
 0x232   : > { %v619_v47 = vpop.permute.xlu0 %618 }
 0x233   : > { %639 = vst.msk [vmem:[%s1222_s21 + $0x1d] sm:$0x1] %vm443_vm6, %v619_v47 }
 0x234   : > { %v621_v48 = vpop.permute.xlu1 %620 }
 0x235   : > { %640 = vst.msk [vmem:[%s1222_s21 + $0x25] sm:$0x1] %vm443_vm6, %v621_v48 }
 0x236   : > { %v623_v49 = vpop.permute.xlu0 %622 }
 0x237   : > { %641 = vst.msk [vmem:[%s1222_s21 + $0x2d] sm:$0x1] %vm443_vm6, %v623_v49 }
 0x238   : > { %v649_v50 = vpop.permute.xlu1 %648 }
 0x239   : > { %670 = vst.msk [vmem:[%s1222_s21 + $0x16] sm:$0x1] %vm443_vm6, %v649_v50 }
 0x23a   : > { %v651_v51 = vpop.permute.xlu0 %650 }
 0x23b   : > { %671 = vst.msk [vmem:[%s1222_s21 + $0x1e] sm:$0x1] %vm443_vm6, %v651_v51 }
 0x23c   : > { %v653_v52 = vpop.permute.xlu1 %652 }
 0x23d   : > { %672 = vst.msk [vmem:[%s1222_s21 + $0x26] sm:$0x1] %vm443_vm6, %v653_v52 }
 0x23e   : > { %v655_v53 = vpop.permute.xlu0 %654 }
 0x23f   : > { %673 = vst.msk [vmem:[%s1222_s21 + $0x2e] sm:$0x1] %vm443_vm6, %v655_v53 }
 0x240   : > { %v681_v54 = vpop.permute.xlu1 %680 }
 0x241   : > { %702 = vst.msk [vmem:[%s1222_s21 + $0x17] sm:$0x1] %vm443_vm6, %v681_v54 }
 0x242   : > { %v683_v55 = vpop.permute.xlu0 %682 }
 0x243   : > { %703 = vst.msk [vmem:[%s1222_s21 + $0x1f] sm:$0x1] %vm443_vm6, %v683_v55 }
 0x244   : > { %v685_v56 = vpop.permute.xlu1 %684 }
 0x245   : > { %704 = vst.msk [vmem:[%s1222_s21 + $0x27] sm:$0x1] %vm443_vm6, %v685_v56 }
 0x246   : > { %v687_v57 = vpop.permute.xlu0 %686 }
 0x247   : > { %705 = vst.msk [vmem:[%s1222_s21 + $0x2f] sm:$0x1] %vm443_vm6, %v687_v57 }
 0x248   : > { %v497_v58 = vpop.permute.xlu1 %496 }
 0x249   : > { %514 = vst.msk [vmem:[%s1222_s21 + $0x31] sm:$0x1] %vm443_vm6, %v497_v58 }
 0x24a   : > { %v499_v59 = vpop.permute.xlu0 %498 }
 0x24b   : > { %515 = vst.msk [vmem:[%s1222_s21 + $0x39] sm:$0x1] %vm443_vm6, %v499_v59 }
 0x24c   : > { %v529_v60 = vpop.permute.xlu1 %528 }
 0x24d   : > { %546 = vst.msk [vmem:[%s1222_s21 + $0x32] sm:$0x1] %vm443_vm6, %v529_v60 }
 0x24e   : > { %v531_v61 = vpop.permute.xlu0 %530 }
 0x24f   : > { %547 = vst.msk [vmem:[%s1222_s21 + $0x3a] sm:$0x1] %vm443_vm6, %v531_v61 }
 0x250   : > { %v561_v62 = vpop.permute.xlu1 %560 }
 0x251   : > { %578 = vst.msk [vmem:[%s1222_s21 + $0x33] sm:$0x1] %vm443_vm6, %v561_v62 }
 0x252   : > { %v563_v63 = vpop.permute.xlu0 %562 }
 0x253   : > { %579 = vst.msk [vmem:[%s1222_s21 + $0x3b] sm:$0x1] %vm443_vm6, %v563_v63 }
 0x254   : > { %v593_v0 = vpop.permute.xlu1 %592 }
 0x255   : > { %610 = vst.msk [vmem:[%s1222_s21 + $0x34] sm:$0x1] %vm443_vm6, %v593_v0 }
 0x256   : > { %v595_v1 = vpop.permute.xlu0 %594 }
 0x257   : > { %611 = vst.msk [vmem:[%s1222_s21 + $0x3c] sm:$0x1] %vm443_vm6, %v595_v1 }
 0x258   : > { %v625_v2 = vpop.permute.xlu1 %624 }
 0x259   : > { %642 = vst.msk [vmem:[%s1222_s21 + $0x35] sm:$0x1] %vm443_vm6, %v625_v2 }
 0x25a   : > { %v627_v3 = vpop.permute.xlu0 %626 }
 0x25b   : > { %643 = vst.msk [vmem:[%s1222_s21 + $0x3d] sm:$0x1] %vm443_vm6, %v627_v3 }
 0x25c   : > { %v657_v4 = vpop.permute.xlu1 %656 }
 0x25d   : > { %674 = vst.msk [vmem:[%s1222_s21 + $0x36] sm:$0x1] %vm443_vm6, %v657_v4 }
 0x25e   : > { %v659_v5 = vpop.permute.xlu0 %658 }
 0x25f   : > { %675 = vst.msk [vmem:[%s1222_s21 + $0x3e] sm:$0x1] %vm443_vm6, %v659_v5 }
 0x260   : > { %v689_v6 = vpop.permute.xlu1 %688 }
 0x261   : > { %706 = vst.msk [vmem:[%s1222_s21 + $0x37] sm:$0x1] %vm443_vm6, %v689_v6 }
 0x262   : > { %v691_v7 = vpop.permute.xlu0 %690 }
 0x263   : > { %707 = vst.msk [vmem:[%s1222_s21 + $0x3f] sm:$0x1] %vm443_vm6, %v691_v7 }
 0x264   : > { %973 = shalt.err (!%p970_p6)
}
 0x265   : > { %s974_s21 = scalar_lea.hbm %s1427_s9, 1024  ;;  %s978_s29 = scalar_lea.hbm %s1484_s3, 2048 }
 0x266   : > { %p975_p7 = scmp.ne.s32.totalorder %s1427_s9, %s974_s21  ;;  %p979_p13 = scmp.lt.s32.totalorder %s1427_s9, %s1484_s3 }
 0x267   : > { %p980_p2 = scmp.lt.s32.totalorder %s978_s29, %s974_s21 }
 0x268   : > { %p976_p10 = pnand %p975_p7, %p1134_p9 }
 0x269   : > { %p981_p8 = por %p980_p2, %p979_p13 }
 0x26a   : > { %p977_p4 = pneg %p976_p10 }
 0x26c   : > { %p982_p12 = pnand %p981_p8, %p977_p4 }
 0x26e   : > { %985 = shalt.err (!%p982_p12)
}
 0x26f   : > { %s1061_s5 = smov 128   ;;  %s1062_s6 = smov 8  }
 0x270   : > { %849 = dma.vmem_to_hbm [thread:$0]  (%p1134_p9), %s1429_s24, 1024, %s1427_s9, %s709_s15, %s1061_s5, %s1061_s5, %s1062_s6  }
 0x271 PF: > { %s738_s7 = sand.u32 1, %s1020_s12   ;;  %p1490_p0 = scmp.ge.s32.totalorder %s1040_s17, 2 }
 0x272   : > { %s739_s8 = scalar_lea.sflag [#allocation5], %s738_s7 }
 0x273   : > { %p856_p1 = pnand %p1490_p0, %p1141_p11 }
 0x275   : > { %p857_p3 = pneg %p856_p1 }
 0x277   : > { %1015 = dma.done.wait (%p857_p3), %s739_s8, 1024  }
 0x278   : > { %1017 = vsyncadd (%p857_p3), %s739_s8, 4294966272  ;;  %s19_s17 = sadd.s32 1, %s1040_s17   ;;  %s1491_s12 = smov %s1024_s13 }
 0x279   : > { %p16_p5 = scmp.ge.s32.totalorder %s19_s17, 4   ;;  %s1492_s13 = smov %s1028_s14 }
 0x27a   : > { %s1493_s14 = smov %s1139_s26  ;;  %s1494_s15 = smov %s1036_s16 }
 0x27b   : > { %s1495_s16 = smov %s1497_s20  ;;  %18 = sbr.rel (!%p16_p5) target bundleno = 6 (0x6), region = 77 }
 0x280   :  { %744 = vsyncpa [#allocation4], 1 }
 0x281   :  { %746 = vsyncpa [#allocation4 + $0x1], 1 }
 0x282   :  { %747 = vsyncpa [#allocation5], 1 }
 0x283   :  { %749 = vsyncpa [#allocation5 + $0x1], 1 }

</bundles_post_ra>
